<compile_context>
chip_gen: v7x
topology: tpu7x:2x2x1
jax: 0.10.0
libtpu: 0.0.40
codegen_flags: <defaults>
</compile_context>

<pallas_src>
import functools

import jax
import jax.numpy as jnp
from jax import lax
from jax.experimental import pallas as pl
from jax.experimental.pallas import tpu as pltpu


def attention_kernel(x_ref, gamma_ref, beta_ref, wqkv_ref, wout_ref,
                     out_ref, *rest, heads, dim_head, eps, compute_dtype):
    """One grid step = one batch element; all heads fused into the step."""
    attn_ref = rest[0] if rest else None
    inner = heads * dim_head

    # ---- LayerNorm (f32) ----
    x = x_ref[0].astype(jnp.float32)                          # (N, D)
    mean = jnp.mean(x, axis=-1, keepdims=True)
    var = jnp.mean((x - mean) ** 2, axis=-1, keepdims=True)
    xn = (x - mean) * lax.rsqrt(var + eps)
    xn = xn * gamma_ref[...] + beta_ref[...]                  # gamma/beta are (1, D)
    xn_c = xn.astype(compute_dtype)

    # ---- Fused QKV projection: one lane-dense (N, D) x (D, 3*inner) matmul.
    # The softmax scale is pre-folded into the Q columns of wqkv in the wrapper.
    qkv = jnp.dot(xn_c, wqkv_ref[...],
                  preferred_element_type=compute_dtype)       # (N, 3*inner)

    # ---- Per-head attention (short static unrolled loop; heads is small).
    head_outs = []
    for h in range(heads):
        lo = h * dim_head
        hi = lo + dim_head
        qh = qkv[:, lo:hi]                                    # (N, d), pre-scaled
        kh = qkv[:, inner + lo:inner + hi]                    # (N, d)
        vh = qkv[:, 2 * inner + lo:2 * inner + hi]            # (N, d)

        # sim = q @ k^T, contracting the head dim (no explicit transpose)
        sim = lax.dot_general(qh, kh, (((1,), (1,)), ((), ())),
                              preferred_element_type=jnp.float32)  # (N, N)

        # numerically-stable softmax (exp kept in f32: safe on v5e/v6e/v7x)
        m = jnp.max(sim, axis=-1, keepdims=True)
        e = jnp.exp(sim - m)
        denom = jnp.sum(e, axis=-1, keepdims=True)
        attn = e * pl.reciprocal(denom, approx=False)         # exact: (N,1) op, ~free

        if attn_ref is not None:
            attn_ref[0, h] = attn.astype(attn_ref.dtype)

        # TODO(synk): dropout(p=0.0) is the identity; nonzero p needs pltpu.prng_*.
        head_outs.append(jnp.dot(attn.astype(compute_dtype), vh,
                                 preferred_element_type=jnp.float32))  # (N, d)

    # ---- Fused output projection: single (N, inner) x (inner, D) matmul.
    ho = jnp.concatenate(head_outs, axis=-1).astype(compute_dtype)     # (N, inner)
    out_ref[0] = jnp.dot(ho, wout_ref[...],
                         preferred_element_type=jnp.float32).astype(out_ref.dtype)


def _derive_vmem_limit_bytes():
    """Chip-aware VMEM budget with headroom (64 MiB on v7x, 128 MiB elsewhere)."""
    try:
        cap = pltpu.get_tpu_info().vmem_capacity_bytes
    except Exception:
        cap = 64 * 1024 * 1024
    return min(int(cap * 3 // 4), 96 * 1024 * 1024)


def attention_forward(x, gamma, beta, wqkv, wout, *, heads, dim_head,
                      return_attn=True, compute_dtype=jnp.bfloat16,
                      attn_dtype=None, eps=1e-5):
    B, N, D = x.shape
    inner = heads * dim_head
    scale = dim_head ** (-0.5)
    if attn_dtype is None:
        attn_dtype = compute_dtype

    # Fold the softmax scale into the Q columns of the fused QKV weight
    # (touches a tiny weight tensor once, wrapper-side), then cast MXU
    # weight operands to compute_dtype.
    wqkv_c = wqkv.at[:, :inner].multiply(scale).astype(compute_dtype)
    wout_c = wout.astype(compute_dtype)

    kernel = functools.partial(attention_kernel, heads=heads, dim_head=dim_head,
                               eps=eps, compute_dtype=compute_dtype)

    out_shapes = [jax.ShapeDtypeStruct((B, N, D), jnp.float32)]
    out_specs = [pl.BlockSpec((1, N, D), lambda b: (b, 0, 0))]
    if return_attn:
        out_shapes.append(jax.ShapeDtypeStruct((B, heads, N, N), attn_dtype))
        out_specs.append(pl.BlockSpec((1, heads, N, N), lambda b: (b, 0, 0, 0)))

    results = pl.pallas_call(
        kernel,
        out_shape=tuple(out_shapes),
        grid_spec=pltpu.PrefetchScalarGridSpec(
            num_scalar_prefetch=0,
            grid=(B,),
            in_specs=[
                pl.BlockSpec((1, N, D), lambda b: (b, 0, 0)),        # x (streamed)
                pl.BlockSpec((1, D), lambda b: (0, 0)),              # gamma (resident)
                pl.BlockSpec((1, D), lambda b: (0, 0)),              # beta (resident)
                pl.BlockSpec((D, 3 * inner), lambda b: (0, 0)),      # Wqkv (resident)
                pl.BlockSpec((inner, D), lambda b: (0, 0)),          # Wout (resident)
            ],
            out_specs=tuple(out_specs),
        ),
        compiler_params=pltpu.CompilerParams(
            dimension_semantics=("parallel",),
            vmem_limit_bytes=_derive_vmem_limit_bytes(),
        ),
    )(x, gamma.reshape(1, -1), beta.reshape(1, -1), wqkv_c, wout_c)

    if return_attn:
        return results            # (out, attn)
    return results[0]             # out only (no (B, H, N, N) HBM writeback)


def attention_ref(x, gamma, beta, wqkv, wout, *, heads, dim_head):
    """Pure-JAX f32 reference mirroring the PyTorch forward."""
    eps = 1e-5
    inner = heads * dim_head
    B, N, _ = x.shape

    mean = x.mean(-1, keepdims=True)
    var = ((x - mean) ** 2).mean(-1, keepdims=True)
    xn = (x - mean) / jnp.sqrt(var + eps) * gamma + beta

    qkv = xn @ wqkv
    q, k, v = (qkv[..., :inner], qkv[..., inner:2 * inner], qkv[..., 2 * inner:])

    def split(t):
        return t.reshape(B, N, heads, dim_head).transpose(0, 2, 1, 3)

    q, k, v = map(split, (q, k, v))
    q = q * (dim_head ** (-0.5))
    sim = jnp.einsum('bhid,bhjd->bhij', q, k)
    attn = jax.nn.softmax(sim, axis=-1)
    out = jnp.einsum('bhij,bhjd->bhid', attn, v)
    out = out.transpose(0, 2, 1, 3).reshape(B, N, inner)
    return out @ wout, attn


if __name__ == "__main__":
    # Small, module-consistent shapes.
    B, N, D = 2, 8, 32
    heads, dim_head = 4, 16
    inner = heads * dim_head

    key = jax.random.PRNGKey(0)
    kx, kg, kb, kqkv, kout = jax.random.split(key, 5)

    x = jax.random.normal(kx, (B, N, D), dtype=jnp.float32)
    gamma = 1.0 + 0.1 * jax.random.normal(kg, (D,), dtype=jnp.float32)
    beta = 0.1 * jax.random.normal(kb, (D,), dtype=jnp.float32)
    wqkv = 0.05 * jax.random.normal(kqkv, (D, 3 * inner), dtype=jnp.float32)
    wout = 0.05 * jax.random.normal(kout, (inner, D), dtype=jnp.float32)

    out_ref_, attn_ref_ = attention_ref(x, gamma, beta, wqkv, wout,
                                        heads=heads, dim_head=dim_head)

    # 1) f32 compute path (tight tolerance; exact softmax reciprocal).
    out32, attn32 = attention_forward(x, gamma, beta, wqkv, wout,
                                      heads=heads, dim_head=dim_head,
                                      compute_dtype=jnp.float32,
                                      attn_dtype=jnp.float32)
    out32 = jax.block_until_ready(out32)
    attn32 = jax.block_until_ready(attn32)
    assert out32.shape == (B, N, D) and attn32.shape == (B, heads, N, N)
    assert jnp.allclose(out32, out_ref_, atol=2e-3, rtol=2e-3)
    assert jnp.allclose(attn32, attn_ref_, atol=2e-3, rtol=2e-3)

    # 2) bf16 MXU path with bf16 attn writeback (default; looser tolerance).
    out16, attn16 = attention_forward(x, gamma, beta, wqkv, wout,
                                      heads=heads, dim_head=dim_head,
                                      compute_dtype=jnp.bfloat16)
    out16 = jax.block_until_ready(out16)
    attn16 = jax.block_until_ready(attn16)
    assert attn16.dtype == jnp.bfloat16
    assert jnp.allclose(out16, out_ref_, atol=3e-2, rtol=3e-2)
    assert jnp.allclose(attn16.astype(jnp.float32), attn_ref_, atol=3e-2, rtol=3e-2)

    # 3) Attention-free path (skips the (B, H, N, N) HBM writeback entirely).
    out_only = attention_forward(x, gamma, beta, wqkv, wout,
                                 heads=heads, dim_head=dim_head,
                                 return_attn=False, compute_dtype=jnp.bfloat16)
    out_only = jax.block_until_ready(out_only)
    assert jnp.allclose(out_only, out_ref_, atol=3e-2, rtol=3e-2)

    print("KERNEL_OK")
</pallas_src>

<mosaic_0001>
module attributes {stable_mosaic.version = 11 : i64} {
  func.func @attention_kernel(%arg0: i32, %arg1: memref<1x8x32xf32, #tpu.memory_space<vmem>>, %arg2: memref<1x32xf32, #tpu.memory_space<vmem>>, %arg3: memref<1x32xf32, #tpu.memory_space<vmem>>, %arg4: memref<32x192xf32, #tpu.memory_space<vmem>>, %arg5: memref<64x32xf32, #tpu.memory_space<vmem>>, %arg6: memref<1x8x32xf32, #tpu.memory_space<vmem>>, %arg7: memref<1x4x8x8xf32, #tpu.memory_space<vmem>>) attributes {dimension_semantics = [#tpu.dimension_semantics<parallel>], iteration_bounds = array<i64: 2>, scalar_prefetch = 0 : i64, scratch_operands = 0 : i64, tpu.core_type = #tpu.core_type<tc>, window_params = [{transform_indices = @transform_0, window_bounds = array<i64: 1, 8, 32>}, {pipeline_mode = #tpu.pipeline_mode<synchronous>, transform_indices = @transform_1, window_bounds = array<i64: 1, 32>}, {pipeline_mode = #tpu.pipeline_mode<synchronous>, transform_indices = @transform_2, window_bounds = array<i64: 1, 32>}, {pipeline_mode = #tpu.pipeline_mode<synchronous>, transform_indices = @transform_3, window_bounds = array<i64: 32, 192>}, {pipeline_mode = #tpu.pipeline_mode<synchronous>, transform_indices = @transform_4, window_bounds = array<i64: 64, 32>}, {transform_indices = @transform_5, window_bounds = array<i64: 1, 8, 32>}, {transform_indices = @transform_6, window_bounds = array<i64: 1, 4, 8, 8>}]} {
    %c0 = arith.constant 0 : index
    %c0_0 = arith.constant 0 : index
    %c0_1 = arith.constant 0 : index
    %0 = vector.load %arg1[%c0, %c0_0, %c0_1] : memref<1x8x32xf32, #tpu.memory_space<vmem>>, vector<1x8x32xf32>
    %1 = vector.shape_cast %0 : vector<1x8x32xf32> to vector<8x32xf32>
    %cst = arith.constant dense<0.000000e+00> : vector<8xf32>
    %2 = vector.multi_reduction <add>, %1, %cst [1] : vector<8x32xf32> to vector<8xf32>
    %3 = vector.shape_cast %2 : vector<8xf32> to vector<8x1xf32>
    %cst_2 = arith.constant 3.200000e+01 : f32
    %4 = vector.broadcast %cst_2 : f32 to vector<8x1xf32>
    %5 = arith.divf %3, %4 : vector<8x1xf32>
    %6 = vector.broadcast %5 : vector<8x1xf32> to vector<8x32xf32>
    %7 = arith.subf %1, %6 : vector<8x32xf32>
    %8 = arith.mulf %7, %7 : vector<8x32xf32>
    %cst_3 = arith.constant dense<0.000000e+00> : vector<8xf32>
    %9 = vector.multi_reduction <add>, %8, %cst_3 [1] : vector<8x32xf32> to vector<8xf32>
    %10 = vector.shape_cast %9 : vector<8xf32> to vector<8x1xf32>
    %cst_4 = arith.constant 3.200000e+01 : f32
    %11 = vector.broadcast %cst_4 : f32 to vector<8x1xf32>
    %12 = arith.divf %10, %11 : vector<8x1xf32>
    %13 = vector.broadcast %5 : vector<8x1xf32> to vector<8x32xf32>
    %14 = arith.subf %1, %13 : vector<8x32xf32>
    %cst_5 = arith.constant 9.99999974E-6 : f32
    %15 = vector.broadcast %cst_5 : f32 to vector<8x1xf32>
    %16 = arith.addf %12, %15 : vector<8x1xf32>
    %17 = math.rsqrt %16 : vector<8x1xf32>
    %18 = vector.broadcast %17 : vector<8x1xf32> to vector<8x32xf32>
    %19 = arith.mulf %14, %18 : vector<8x32xf32>
    %c0_6 = arith.constant 0 : index
    %c0_7 = arith.constant 0 : index
    %20 = vector.load %arg2[%c0_6, %c0_7] : memref<1x32xf32, #tpu.memory_space<vmem>>, vector<1x32xf32>
    %21 = vector.broadcast %20 : vector<1x32xf32> to vector<8x32xf32>
    %22 = arith.mulf %19, %21 : vector<8x32xf32>
    %c0_8 = arith.constant 0 : index
    %c0_9 = arith.constant 0 : index
    %23 = vector.load %arg3[%c0_8, %c0_9] : memref<1x32xf32, #tpu.memory_space<vmem>>, vector<1x32xf32>
    %24 = vector.broadcast %23 : vector<1x32xf32> to vector<8x32xf32>
    %25 = arith.addf %22, %24 : vector<8x32xf32>
    %c0_10 = arith.constant 0 : index
    %c0_11 = arith.constant 0 : index
    %26 = vector.load %arg4[%c0_10, %c0_11] : memref<32x192xf32, #tpu.memory_space<vmem>>, vector<32x192xf32>
    %cst_12 = arith.constant dense<0.000000e+00> : vector<8x192xf32>
    %27 = tpu.matmul %25, %26, %cst_12 {dimension_numbers = #tpu.dot_dimension_numbers<[1], [0], [0], [1], [0, 0, 1, 1], [], []>} : vector<8x32xf32>, vector<32x192xf32>, vector<8x192xf32> -> vector<8x192xf32>
    %28 = vector.extract_strided_slice %27 {offsets = [0, 0], sizes = [8, 16], strides = [1, 1]} : vector<8x192xf32> to vector<8x16xf32>
    %29 = vector.extract_strided_slice %27 {offsets = [0, 64], sizes = [8, 16], strides = [1, 1]} : vector<8x192xf32> to vector<8x16xf32>
    %30 = vector.extract_strided_slice %27 {offsets = [0, 128], sizes = [8, 16], strides = [1, 1]} : vector<8x192xf32> to vector<8x16xf32>
    %cst_13 = arith.constant dense<0.000000e+00> : vector<8x8xf32>
    %31 = tpu.matmul %28, %29, %cst_13 {dimension_numbers = #tpu.dot_dimension_numbers<[1], [1], [0], [0], [0, 0, 1, 0], [], []>} : vector<8x16xf32>, vector<8x16xf32>, vector<8x8xf32> -> vector<8x8xf32>
    %cst_14 = arith.constant dense<0xFF800000> : vector<8xf32>
    %32 = vector.multi_reduction <maximumf>, %31, %cst_14 [1] : vector<8x8xf32> to vector<8xf32>
    %33 = vector.shape_cast %32 : vector<8xf32> to vector<8x1xf32>
    %34 = vector.broadcast %33 : vector<8x1xf32> to vector<8x8xf32>
    %35 = arith.subf %31, %34 : vector<8x8xf32>
    %36 = math.exp %35 : vector<8x8xf32>
    %cst_15 = arith.constant dense<0.000000e+00> : vector<8xf32>
    %37 = vector.multi_reduction <add>, %36, %cst_15 [1] : vector<8x8xf32> to vector<8xf32>
    %38 = vector.shape_cast %37 : vector<8xf32> to vector<8x1xf32>
    %39 = tpu.reciprocal %38 : vector<8x1xf32> -> vector<8x1xf32>
    %40 = vector.broadcast %39 : vector<8x1xf32> to vector<8x8xf32>
    %41 = arith.mulf %36, %40 : vector<8x8xf32>
    %c0_16 = arith.constant 0 : index
    %c0_17 = arith.constant 0 : index
    %c0_18 = arith.constant 0 : index
    %c0_19 = arith.constant 0 : index
    %42 = vector.load %arg7[%c0_16, %c0_17, %c0_18, %c0_19] : memref<1x4x8x8xf32, #tpu.memory_space<vmem>>, vector<1x1x8x8xf32>
    %43 = vector.shape_cast %42 : vector<1x1x8x8xf32> to vector<8x8xf32>
    %44 = vector.shape_cast %41 : vector<8x8xf32> to vector<1x1x8x8xf32>
    tpu.vector_store %arg7[%c0_16, %c0_17, %c0_18, %c0_19], %44 {strides = array<i32>} : memref<1x4x8x8xf32, #tpu.memory_space<vmem>>, vector<1x1x8x8xf32>,
    %cst_20 = arith.constant dense<0.000000e+00> : vector<8x16xf32>
    %45 = tpu.matmul %41, %30, %cst_20 {dimension_numbers = #tpu.dot_dimension_numbers<[1], [0], [0], [1], [0, 0, 1, 1], [], []>} : vector<8x8xf32>, vector<8x16xf32>, vector<8x16xf32> -> vector<8x16xf32>
    %46 = vector.extract_strided_slice %27 {offsets = [0, 16], sizes = [8, 16], strides = [1, 1]} : vector<8x192xf32> to vector<8x16xf32>
    %47 = vector.extract_strided_slice %27 {offsets = [0, 80], sizes = [8, 16], strides = [1, 1]} : vector<8x192xf32> to vector<8x16xf32>
    %48 = vector.extract_strided_slice %27 {offsets = [0, 144], sizes = [8, 16], strides = [1, 1]} : vector<8x192xf32> to vector<8x16xf32>
    %cst_21 = arith.constant dense<0.000000e+00> : vector<8x8xf32>
    %49 = tpu.matmul %46, %47, %cst_21 {dimension_numbers = #tpu.dot_dimension_numbers<[1], [1], [0], [0], [0, 0, 1, 0], [], []>} : vector<8x16xf32>, vector<8x16xf32>, vector<8x8xf32> -> vector<8x8xf32>
    %cst_22 = arith.constant dense<0xFF800000> : vector<8xf32>
    %50 = vector.multi_reduction <maximumf>, %49, %cst_22 [1] : vector<8x8xf32> to vector<8xf32>
    %51 = vector.shape_cast %50 : vector<8xf32> to vector<8x1xf32>
    %52 = vector.broadcast %51 : vector<8x1xf32> to vector<8x8xf32>
    %53 = arith.subf %49, %52 : vector<8x8xf32>
    %54 = math.exp %53 : vector<8x8xf32>
    %cst_23 = arith.constant dense<0.000000e+00> : vector<8xf32>
    %55 = vector.multi_reduction <add>, %54, %cst_23 [1] : vector<8x8xf32> to vector<8xf32>
    %56 = vector.shape_cast %55 : vector<8xf32> to vector<8x1xf32>
    %57 = tpu.reciprocal %56 : vector<8x1xf32> -> vector<8x1xf32>
    %58 = vector.broadcast %57 : vector<8x1xf32> to vector<8x8xf32>
    %59 = arith.mulf %54, %58 : vector<8x8xf32>
    %c0_24 = arith.constant 0 : index
    %c1 = arith.constant 1 : index
    %c0_25 = arith.constant 0 : index
    %c0_26 = arith.constant 0 : index
    %60 = vector.load %arg7[%c0_24, %c1, %c0_25, %c0_26] : memref<1x4x8x8xf32, #tpu.memory_space<vmem>>, vector<1x1x8x8xf32>
    %61 = vector.shape_cast %60 : vector<1x1x8x8xf32> to vector<8x8xf32>
    %62 = vector.shape_cast %59 : vector<8x8xf32> to vector<1x1x8x8xf32>
    tpu.vector_store %arg7[%c0_24, %c1, %c0_25, %c0_26], %62 {strides = array<i32>} : memref<1x4x8x8xf32, #tpu.memory_space<vmem>>, vector<1x1x8x8xf32>,
    %cst_27 = arith.constant dense<0.000000e+00> : vector<8x16xf32>
    %63 = tpu.matmul %59, %48, %cst_27 {dimension_numbers = #tpu.dot_dimension_numbers<[1], [0], [0], [1], [0, 0, 1, 1], [], []>} : vector<8x8xf32>, vector<8x16xf32>, vector<8x16xf32> -> vector<8x16xf32>
    %64 = vector.extract_strided_slice %27 {offsets = [0, 32], sizes = [8, 16], strides = [1, 1]} : vector<8x192xf32> to vector<8x16xf32>
    %65 = vector.extract_strided_slice %27 {offsets = [0, 96], sizes = [8, 16], strides = [1, 1]} : vector<8x192xf32> to vector<8x16xf32>
    %66 = vector.extract_strided_slice %27 {offsets = [0, 160], sizes = [8, 16], strides = [1, 1]} : vector<8x192xf32> to vector<8x16xf32>
    %cst_28 = arith.constant dense<0.000000e+00> : vector<8x8xf32>
    %67 = tpu.matmul %64, %65, %cst_28 {dimension_numbers = #tpu.dot_dimension_numbers<[1], [1], [0], [0], [0, 0, 1, 0], [], []>} : vector<8x16xf32>, vector<8x16xf32>, vector<8x8xf32> -> vector<8x8xf32>
    %cst_29 = arith.constant dense<0xFF800000> : vector<8xf32>
    %68 = vector.multi_reduction <maximumf>, %67, %cst_29 [1] : vector<8x8xf32> to vector<8xf32>
    %69 = vector.shape_cast %68 : vector<8xf32> to vector<8x1xf32>
    %70 = vector.broadcast %69 : vector<8x1xf32> to vector<8x8xf32>
    %71 = arith.subf %67, %70 : vector<8x8xf32>
    %72 = math.exp %71 : vector<8x8xf32>
    %cst_30 = arith.constant dense<0.000000e+00> : vector<8xf32>
    %73 = vector.multi_reduction <add>, %72, %cst_30 [1] : vector<8x8xf32> to vector<8xf32>
    %74 = vector.shape_cast %73 : vector<8xf32> to vector<8x1xf32>
    %75 = tpu.reciprocal %74 : vector<8x1xf32> -> vector<8x1xf32>
    %76 = vector.broadcast %75 : vector<8x1xf32> to vector<8x8xf32>
    %77 = arith.mulf %72, %76 : vector<8x8xf32>
    %c0_31 = arith.constant 0 : index
    %c2 = arith.constant 2 : index
    %c0_32 = arith.constant 0 : index
    %c0_33 = arith.constant 0 : index
    %78 = vector.load %arg7[%c0_31, %c2, %c0_32, %c0_33] : memref<1x4x8x8xf32, #tpu.memory_space<vmem>>, vector<1x1x8x8xf32>
    %79 = vector.shape_cast %78 : vector<1x1x8x8xf32> to vector<8x8xf32>
    %80 = vector.shape_cast %77 : vector<8x8xf32> to vector<1x1x8x8xf32>
    tpu.vector_store %arg7[%c0_31, %c2, %c0_32, %c0_33], %80 {strides = array<i32>} : memref<1x4x8x8xf32, #tpu.memory_space<vmem>>, vector<1x1x8x8xf32>,
    %cst_34 = arith.constant dense<0.000000e+00> : vector<8x16xf32>
    %81 = tpu.matmul %77, %66, %cst_34 {dimension_numbers = #tpu.dot_dimension_numbers<[1], [0], [0], [1], [0, 0, 1, 1], [], []>} : vector<8x8xf32>, vector<8x16xf32>, vector<8x16xf32> -> vector<8x16xf32>
    %82 = vector.extract_strided_slice %27 {offsets = [0, 48], sizes = [8, 16], strides = [1, 1]} : vector<8x192xf32> to vector<8x16xf32>
    %83 = vector.extract_strided_slice %27 {offsets = [0, 112], sizes = [8, 16], strides = [1, 1]} : vector<8x192xf32> to vector<8x16xf32>
    %84 = vector.extract_strided_slice %27 {offsets = [0, 176], sizes = [8, 16], strides = [1, 1]} : vector<8x192xf32> to vector<8x16xf32>
    %cst_35 = arith.constant dense<0.000000e+00> : vector<8x8xf32>
    %85 = tpu.matmul %82, %83, %cst_35 {dimension_numbers = #tpu.dot_dimension_numbers<[1], [1], [0], [0], [0, 0, 1, 0], [], []>} : vector<8x16xf32>, vector<8x16xf32>, vector<8x8xf32> -> vector<8x8xf32>
    %cst_36 = arith.constant dense<0xFF800000> : vector<8xf32>
    %86 = vector.multi_reduction <maximumf>, %85, %cst_36 [1] : vector<8x8xf32> to vector<8xf32>
    %87 = vector.shape_cast %86 : vector<8xf32> to vector<8x1xf32>
    %88 = vector.broadcast %87 : vector<8x1xf32> to vector<8x8xf32>
    %89 = arith.subf %85, %88 : vector<8x8xf32>
    %90 = math.exp %89 : vector<8x8xf32>
    %cst_37 = arith.constant dense<0.000000e+00> : vector<8xf32>
    %91 = vector.multi_reduction <add>, %90, %cst_37 [1] : vector<8x8xf32> to vector<8xf32>
    %92 = vector.shape_cast %91 : vector<8xf32> to vector<8x1xf32>
    %93 = tpu.reciprocal %92 : vector<8x1xf32> -> vector<8x1xf32>
    %94 = vector.broadcast %93 : vector<8x1xf32> to vector<8x8xf32>
    %95 = arith.mulf %90, %94 : vector<8x8xf32>
    %c0_38 = arith.constant 0 : index
    %c3 = arith.constant 3 : index
    %c0_39 = arith.constant 0 : index
    %c0_40 = arith.constant 0 : index
    %96 = vector.load %arg7[%c0_38, %c3, %c0_39, %c0_40] : memref<1x4x8x8xf32, #tpu.memory_space<vmem>>, vector<1x1x8x8xf32>
    %97 = vector.shape_cast %96 : vector<1x1x8x8xf32> to vector<8x8xf32>
    %98 = vector.shape_cast %95 : vector<8x8xf32> to vector<1x1x8x8xf32>
    tpu.vector_store %arg7[%c0_38, %c3, %c0_39, %c0_40], %98 {strides = array<i32>} : memref<1x4x8x8xf32, #tpu.memory_space<vmem>>, vector<1x1x8x8xf32>,
    %cst_41 = arith.constant dense<0.000000e+00> : vector<8x16xf32>
    %99 = tpu.matmul %95, %84, %cst_41 {dimension_numbers = #tpu.dot_dimension_numbers<[1], [0], [0], [1], [0, 0, 1, 1], [], []>} : vector<8x8xf32>, vector<8x16xf32>, vector<8x16xf32> -> vector<8x16xf32>
    %100 = tpu.concatenate %45, %63, %81, %99 in 1 : vector<8x16xf32>, vector<8x16xf32>, vector<8x16xf32>, vector<8x16xf32> -> vector<8x64xf32>
    %c0_42 = arith.constant 0 : index
    %c0_43 = arith.constant 0 : index
    %101 = vector.load %arg5[%c0_42, %c0_43] : memref<64x32xf32, #tpu.memory_space<vmem>>, vector<64x32xf32>
    %cst_44 = arith.constant dense<0.000000e+00> : vector<8x32xf32>
    %102 = tpu.matmul %100, %101, %cst_44 {dimension_numbers = #tpu.dot_dimension_numbers<[1], [0], [0], [1], [0, 0, 1, 1], [], []>} : vector<8x64xf32>, vector<64x32xf32>, vector<8x32xf32> -> vector<8x32xf32>
    %c0_45 = arith.constant 0 : index
    %c0_46 = arith.constant 0 : index
    %c0_47 = arith.constant 0 : index
    %103 = vector.load %arg6[%c0_45, %c0_46, %c0_47] : memref<1x8x32xf32, #tpu.memory_space<vmem>>, vector<1x8x32xf32>
    %104 = vector.shape_cast %103 : vector<1x8x32xf32> to vector<8x32xf32>
    %105 = vector.shape_cast %102 : vector<8x32xf32> to vector<1x8x32xf32>
    tpu.vector_store %arg6[%c0_45, %c0_46, %c0_47], %105 {strides = array<i32>} : memref<1x8x32xf32, #tpu.memory_space<vmem>>, vector<1x8x32xf32>,
    return
  }
  func.func @transform_0(%arg0: i32) -> (i32, i32, i32) {
    %c0_i32 = arith.constant 0 : i32
    %c0_i32_0 = arith.constant 0 : i32
    %c0_i32_1 = arith.constant 0 : i32
    return %arg0, %c0_i32, %c0_i32_0 : i32, i32, i32
  }
  func.func @transform_1(%arg0: i32) -> (i32, i32) {
    %c0_i32 = arith.constant 0 : i32
    %c0_i32_0 = arith.constant 0 : i32
    %c0_i32_1 = arith.constant 0 : i32
    return %c0_i32, %c0_i32_0 : i32, i32
  }
  func.func @transform_2(%arg0: i32) -> (i32, i32) {
    %c0_i32 = arith.constant 0 : i32
    %c0_i32_0 = arith.constant 0 : i32
    %c0_i32_1 = arith.constant 0 : i32
    return %c0_i32, %c0_i32_0 : i32, i32
  }
  func.func @transform_3(%arg0: i32) -> (i32, i32) {
    %c0_i32 = arith.constant 0 : i32
    %c0_i32_0 = arith.constant 0 : i32
    %c0_i32_1 = arith.constant 0 : i32
    return %c0_i32, %c0_i32_0 : i32, i32
  }
  func.func @transform_4(%arg0: i32) -> (i32, i32) {
    %c0_i32 = arith.constant 0 : i32
    %c0_i32_0 = arith.constant 0 : i32
    %c0_i32_1 = arith.constant 0 : i32
    return %c0_i32, %c0_i32_0 : i32, i32
  }
  func.func @transform_5(%arg0: i32) -> (i32, i32, i32) {
    %c0_i32 = arith.constant 0 : i32
    %c0_i32_0 = arith.constant 0 : i32
    %c0_i32_1 = arith.constant 0 : i32
    return %arg0, %c0_i32, %c0_i32_0 : i32, i32, i32
  }
  func.func @transform_6(%arg0: i32) -> (i32, i32, i32, i32) {
    %c0_i32 = arith.constant 0 : i32
    %c0_i32_0 = arith.constant 0 : i32
    %c0_i32_1 = arith.constant 0 : i32
    %c0_i32_2 = arith.constant 0 : i32
    return %arg0, %c0_i32, %c0_i32_0, %c0_i32_1 : i32, i32, i32, i32
  }
}

</mosaic_0001>

<bundles_post_ra>
// kernel: tpu_custom_call.1
= control target key start
LH: loop header
LB: loop body
LE: loop exit
PB: predicated region body
PF: predicated region fallthrough
CT: control target
= control target key end

     0   :  { %12 = vsyncpa [#allocation3], 0  ;;  %s1893_s0 = inlined_call_operand.vmem [shape: f32[2,8,32], index: 0, kind: input, shape index: {}]   ;;  %s1894_s1 = inlined_call_operand.vmem [shape: f32[1,32], index: 1, kind: input, shape index: {}]   ;;  %s1895_s2 = inlined_call_operand.vmem [shape: f32[1,32], index: 2, kind: input, shape index: {}]   ;;  %s1896_s3 = inlined_call_operand.vmem [shape: f32[32,192], index: 3, kind: input, shape index: {}]   ;;  %s1897_s4 = inlined_call_operand.vmem [shape: f32[64,32], index: 4, kind: input, shape index: {}]   ;;  %s1898_s5 = inlined_call_operand.hbm [shape: f32[2,8,32], index: 5, kind: output, shape index: {0}]   ;;  %s1899_s6 = inlined_call_operand.hbm [shape: f32[2,4,8,8], index: 6, kind: output, shape index: {1}]  }
   0x1   :  { %14 = vsyncpa [#allocation3 + $0x1], 0 }
   0x2   :  { %15 = vsyncpa [#allocation5], 0 }
   0x3   :  { %17 = vsyncpa [#allocation5 + $0x1], 0  ;;  %s1620_s21 = smov 0   ;;  %s1622_s22 = smov 0  }
   0x4   :  { %s1624_s23 = smov 0   ;;  %s1626_s24 = smov 0  }
   0x5 LB: > { %s1641_s25 = sadd.s32 4294967295, %s1569_s24   ;;  %s1263_s26 = sadd.s32 4294967294, %s1569_s24   ;;  %s1569_s24 = sphi %s1626_s24, %s1905_s24   ;;  %s1565_s23 = sphi %s1624_s23, %s1904_s23   ;;  %s1561_s22 = sphi %s1622_s22, %s1903_s22   ;;  %s1557_s21 = sphi %s1620_s21, %s1902_s21  }
   0x6   : > { %s1645_s27 = sadd.s32 1, %s1569_s24   ;;  %s140_s28 = sadd.s32 1, %s1565_s23 }
   0x7   : > { %s137_s29 = ssub.s32 %s1569_s24, %s1645_s27  ;;  %p150_p0 = scmp.ne.s32.totalorder %s1565_s23, %s1561_s22 }
   0x8   : > { %p138_p1 = scmp.eq.s32.totalorder %s137_s29, 0  ;;  %p151_p2 = scmp.eq.s32.totalorder %s1641_s25, 1 }
   0x9   : > { %p156_p3 = scmp.ne.s32.totalorder %s1561_s22, %s1557_s21  ;;  %p157_p4 = scmp.eq.s32.totalorder %s1263_s26, 1 }
   0xa   : > { %s1656_s30 = scalar_select %p138_p1, %s1565_s23, %s140_s28  }
   0xb   : > { %p1658_p5 = por %p151_p2, %p150_p0  ;;  %p1662_p6 = por %p157_p4, %p156_p3 }
   0xc   : > { %p1266_p7 = scmp.ge.s32.totalorder %s1569_s24, 1  ;;  %p220_p8 = scmp.lt.s32.totalorder %s1569_s24, 3 }
   0xe   : > { %p221_p9 = pnand %p1266_p7, %p220_p8 }
   0xf   : > { %p254_p10 = scmp.lt.s32.totalorder (!%p221_p9), %s1641_s25, 1  ;;  %vm259_vm0 = vcmask (!%p221_p9), 261120   ;;  %v291_v7 = vld [vmem:[%s1896_s3 + $0x8] sm:$0xff] (!%p221_p9)  ;;  %v293_v8 = vld [vmem:[%s1896_s3 + $0x18] sm:$0xff] (!%p221_p9)  ;;  %v290_v9 = vld [vmem:[%s1896_s3] sm:$0xff] (!%p221_p9)  ;;  %v1571_v14 = vmov (!%p221_p9), 0.0  }
  0x10   : > { %224 = sbr.rel (%p221_p9) target bundleno = 1768 (0x6e8), region = 40  ;;  %v1381_v10 = vpack.c.bf16 (!%p221_p9), %v293_v8, %v291_v7  ;;  %v292_v11 = vld [vmem:[%s1896_s3 + $0x10] sm:$0xff] (!%p221_p9)  ;;  %v295_v12 = vld [vmem:[%s1896_s3 + $0x28] sm:$0xff] (!%p221_p9)  ;;  %v297_v13 = vld [vmem:[%s1896_s3 + $0x38] sm:$0xff] (!%p221_p9)  ;;  %365 = vmatprep.mubr.f32.mxu1 (!%p221_p9), %v1571_v14  ;;  %1332 = vmatprep.subr.mxu0 (!%p221_p9), %v1571_v14  ;;  %vm1572_vm1 = vmmov (!%p221_p9), 0   ;;  %s1573_s19 = smov (!%p221_p9), 112  }
  0x11   : > { %v1383_v15 = vpack.c.bf16 (!%p221_p9), %v292_v11, %v290_v9  ;;  %v1385_v16 = vpack.c.bf16 (!%p221_p9), %v297_v13, %v295_v12  ;;  %v294_v17 = vld [vmem:[%s1896_s3 + $0x20] sm:$0xff] (!%p221_p9)  ;;  %v296_v18 = vld [vmem:[%s1896_s3 + $0x30] sm:$0xff] (!%p221_p9)  ;;  %1334 = vmatprep.mubr.msk.f32.mxu0 (!%p221_p9), %vm1572_vm1, %v1571_v14  ;;  %s1574_s20 = smov (!%p221_p9), 64   ;;  %s1575_s26 = smov (!%p221_p9), 48   ;;  %vm375_vm2 = vcmask (!%p221_p9), 130048   ;;  %vm450_vm3 = vcmask (!%p221_p9), 64512  }
  0x12   : > { %1382 = vmatprep.subr.bf16.mxu1 (!%p221_p9), %v1381_v10  ;;  %v1387_v19 = vpack.c.bf16 (!%p221_p9), %v296_v18, %v294_v17  ;;  %v1270_v24 = vld [vmem:[%s1894_s1] ss:$0 sm:$0xff] (!%p221_p9)  ;;  %s1576_s28 = smov (!%p221_p9), 32   ;;  %s1577_s29 = smov (!%p221_p9), 96   ;;  %vm1052_vm4 = vcmask (!%p221_p9), 392192   ;;  %vm1062_vm5 = vcmask (!%p221_p9), 523264  }
  0x13   : > { %1384 = vmatpush1.bf16.msra.mxu1 (!%p221_p9), %v1383_v15  ;;  %v1271_v26 = vld [vmem:[%s1895_s2] ss:$0 sm:$0xff] (!%p221_p9)  ;;  %s1757_s11 = sand.u32 (!%p221_p9), 1, %s1561_s22   ;;  %s1581_s14 = smov (!%p221_p9), [#allocation4]  }
  0x14   : > { %1386 = vmatprep.subr.bf16.mxu1 (!%p221_p9), %v1385_v16  ;;  %s1268_s12 = sshll.u32 (!%p221_p9), %s1757_s11, 5  ;;  %s1479_s15 = sshll.u32 (!%p221_p9), %s1581_s14, 4  ;;  %s1480_s15 = int_to_ptr.vmem [resolvable:$false] %s1479_s15 }
  0x17   : > { %s255_s9 = scalar_select %p254_p10, %s1641_s25, 1  ;;  %1388 = vmatpush1.bf16.msra.mxu1 %v1387_v19 }
  0x18   : > { %1322 = vmatprep.subr.mxu1 %v1571_v14 }
  0x19   : > { %s1269_s10 = sshll.u32 %s255_s9, 3  ;;  %s1578_s9 = smov 16  }
  0x1a   : > { %s257_s13 = scalar_lea.vmem %s1893_s0, %s1269_s10  ;;  %s1579_s10 = smov 80  }
  0x1b   : > { %v258_v0 = vld [vmem:[%s257_s13] sm:$0xff]  ;;  %s1761_s13 = scalar_lea.vmem [#allocation4], %s1268_s12 }
  0x1c   : > { %v260_v1 = vsel %vm259_vm0, %v258_v0, 0.0 }
  0x1d   : > { %261 = vadd.xlane.f32.xlu0 %v260_v1 }
  0xaa   : > { %v262_v2 = vpop.xlane.xlu0 %261 }
  0xab   : > { %v264_v3 = vmul.f32 0.03125, %v262_v2 }
  0xad   : > { %v265_v4 = vsub.f32 %v258_v0, %v264_v3 }
  0xaf   : > { %v266_v5 = vmul.f32 %v265_v4, %v265_v4 }
  0xb1   : > { %v267_v6 = vsel %vm259_vm0, %v266_v5, 0.0 }
  0xb2   : > { %268 = vadd.xlane.f32.xlu0 %v267_v6 }
 0x13f   : > { %v269_v20 = vpop.xlane.xlu0 %268 }
 0x140   : > { %v270_v21 = vmul.f32 0.03125, %v269_v20 }
 0x142   : > { %v271_v22 = vadd.f32 1e-05, %v270_v21 }
 0x144   : > { %1457 = vrsqrt.f32 %v271_v22  ;;  %v1054_v22 = vld [vmem:[%s1897_s4] sm:$0xff] }
 0x14e   : > { %v1458_v23 = vpop.eup %1457 }
 0x14f   : > { %v273_v25 = vmul.f32 %v1458_v23, %v265_v4  ;;  %v1055_v23 = vld [vmem:[%s1897_s4 + $0x8] sm:$0xff] }
 0x151   : > { %v281_v27 = vmul.f32 %v1270_v24, %v273_v25  ;;  %v1580_v24 = vmov 0.0|0.0   ;;  %v1390_v25 = vpack.c.bf16 %v1055_v23, %v1054_v22 }
 0x153   : > { %v289_v28 = vadd.f32 %v1271_v26, %v281_v27  ;;  %v1057_v26 = vld [vmem:[%s1897_s4 + $0x18] sm:$0xff] }
 0x155   : > { %1272 = vmatmul.mubr.msk.f32.vlgmr.msra.gmra.mrb[0].mxu1 %vm259_vm0, %v289_v28  ;;  %v1058_v28 = vld [vmem:[%s1897_s4 + $0x20] sm:$0xff] }
 0x156   : > { %1324 = vmatprep.mubr.msk.f32.mxu1 %vm1572_vm1, %v1571_v14 }
 0x228   : > { %v367_v29 = vpop.f32.mrb[0].mxu1 }
 0x229   : > { %536 = vrot.lane.b32.xlu0 %v367_v29, %s1573_s19  ;;  %373 = vrot.lane.b32.xlu1 %v367_v29, %s1574_s20  ;;  %v1714_v30 = vpop.f32.mrb[1].mxu1 }
 0x22d   : > { %538 = vrot.lane.b32.xlu1 %v367_v29, %s1575_s26 }
 0x231   : > { %706 = vrot.lane.b32.xlu1 %v367_v29, %s1576_s28 }
 0x235   : > { %704 = vrot.lane.b32.xlu1 %v367_v29, %s1577_s29 }
 0x239   : > { %873 = vrot.lane.b32.xlu1 %v367_v29, %s1578_s9 }
 0x23d   : > { %871 = vrot.lane.b32.xlu1 %v367_v29, %s1579_s10 }
 0x29b   : > { %v374_v31 = vpop.permute.xlu1 %373  ;;  %v537_v33 = vpop.permute.xlu0 %536 }
 0x29c   : > { %1323 = vmatpush3.xpose.msk.msra.mxu1 %vm375_vm2, %v374_v31 }
 0x29d   : > { %1327 = vmatprep.subr.mxu1 %v1571_v14 }
 0x29f   : > { %1325 = vmatmul.mubr.msk.f32.vlgmr.msra.gmra.mrb[2].mxu1 %vm375_vm2, %v367_v29  ;;  %v539_v32 = vpop.permute.xlu1 %538  ;;  %v1059_v29 = vld [vmem:[%s1897_s4 + $0x28] sm:$0xff] }
 0x2a0   : > { %1328 = vmatpush3.msra.mxu1 %v1714_v30  ;;  %1333 = vmatpush3.xpose.msk.msra.mxu0 %vm375_vm2, %v539_v32  ;;  %v1396_v31 = vpack.c.bf16 %v1059_v29, %v1058_v28  ;;  %v1061_v32 = vld [vmem:[%s1897_s4 + $0x38] sm:$0xff] }
 0x2a1   : > { %1342 = vmatprep.subr.mxu0 %v1571_v14  ;;  %1329 = vmatprep.mubr.msk.f32.mxu1 %vm1572_vm1, %v1571_v14 }
 0x2a2   : > { %1337 = vmatprep.subr.mxu1 %v1571_v14 }
 0x2a3   : > { %1335 = vmatmul.mubr.msk.f32.vlgmr.msra.gmra.mrb[0].mxu0 %vm375_vm2, %v537_v33  ;;  %v707_v34 = vpop.permute.xlu1 %706 }
 0x2a4   : > { %1343 = vmatpush3.xpose.msk.msra.mxu0 %vm375_vm2, %v707_v34  ;;  %1344 = vmatprep.mubr.msk.f32.mxu0 %vm1572_vm1, %v1571_v14 }
 0x2a5   : > { %1352 = vmatprep.subr.mxu0 %v1571_v14 }
 0x2a7   : > { %v705_v35 = vpop.permute.xlu1 %704 }
 0x2a8   : > { %1345 = vmatmul.mubr.msk.f32.vlgmr.msra.gmra.mrb[2].mxu0 %vm375_vm2, %v705_v35 }
 0x2a9   : > { %1354 = vmatprep.mubr.msk.f32.mxu0 %vm1572_vm1, %v1571_v14 }
 0x2ab   : > { %v874_v36 = vpop.permute.xlu1 %873 }
 0x2ac   : > { %1353 = vmatpush3.xpose.msk.msra.mxu0 %vm375_vm2, %v874_v36 }
 0x2ad   : > { %1389 = vmatprep.subr.bf16.mxu0 %v1580_v24 }
 0x2af   : > { %v872_v37 = vpop.permute.xlu1 %871 }
 0x2b0   : > { %1355 = vmatmul.mubr.msk.f32.vlgmr.msra.gmra.mrb[4].mxu0 %vm375_vm2, %v872_v37 }
 0x2b1   : > { %1378 = vmatprep.mubr.msk.f32.mxu0 %vm1572_vm1, %v1571_v14  ;;  %1391 = vmatpush3.bf16.msra.mxu0 %v1390_v25 }
 0x2b2   : > { %1392 = vmatprep.subr.bf16.mxu0 %v1580_v24 }
 0x372   : > { %v446_v38 = vpop.f32.mrb[2].mxu1 }
 0x373   : > { %v1326_v39 = vpop.f32.mrb[3].mxu1  ;;  %v451_v40 = vsel %vm450_vm3, %v446_v38, -inf }
 0x374   : > { %452 = vmax.xlane.f32.xlu1 %v451_v40 }
 0x376   : > { %v610_v41 = vpop.f32.mrb[0].mxu0 }
 0x377   : > { %v1336_v42 = vpop.f32.mrb[1].mxu0  ;;  %v614_v43 = vsel %vm450_vm3, %v610_v41, -inf }
 0x378   : > { %615 = vmax.xlane.f32.xlu0 %v614_v43 }
 0x37b   : > { %v778_v44 = vpop.f32.mrb[2].mxu0 }
 0x37c   : > { %v1346_v45 = vpop.f32.mrb[3].mxu0  ;;  %v782_v46 = vsel %vm450_vm3, %v778_v44, -inf }
 0x37d   : > { %783 = vmax.xlane.f32.xlu1 %v782_v46 }
 0x383   : > { %v945_v47 = vpop.f32.mrb[4].mxu0 }
 0x384   : > { %v1356_v48 = vpop.f32.mrb[5].mxu0  ;;  %v949_v49 = vsel %vm450_vm3, %v945_v47, -inf }
 0x385   : > { %950 = vmax.xlane.f32.xlu0 %v949_v49 }
 0x38e   : > { %628 = vrot.lane.b32.xlu1 %v1714_v30, %s1573_s19 }
 0x401   : > { %v453_v50 = vpop.xlane.xlu1 %452 }
 0x402   : > { %v454_v51 = vsub.f32 %v446_v38, %v453_v50 }
 0x404   : > { %v455_v52 = vmul.f32 1.442695, %v454_v51 }
 0x405   : > { %v616_v53 = vpop.xlane.xlu0 %615 }
 0x406   : > { %1459 = vpow2.f32 %v455_v52  ;;  %v617_v54 = vsub.f32 %v610_v41, %v616_v53 }
 0x408   : > { %v618_v55 = vmul.f32 1.442695, %v617_v54 }
 0x40a   : > { %1461 = vpow2.f32 %v618_v55  ;;  %v784_v56 = vpop.xlane.xlu1 %783 }
 0x40b   : > { %v785_v57 = vsub.f32 %v778_v44, %v784_v56 }
 0x40d   : > { %v786_v58 = vmul.f32 1.442695, %v785_v57 }
 0x40e   : > { %v629_v6 = vpop.permute.xlu1 %628 }
 0x40f   : > { %1463 = vpow2.f32 %v786_v58 }
 0x410   : > { %v1460_v59 = vpop.eup %1459 }
 0x411   : > { %v457_v60 = vsel %vm450_vm3, %v1460_v59, 0.0 }
 0x412   : > { %v951_v61 = vpop.xlane.xlu0 %950  ;;  %458 = vadd.xlane.f32.xlu1 %v457_v60 }
 0x413   : > { %v952_v62 = vsub.f32 %v945_v47, %v951_v61 }
 0x414   : > { %v1462_v63 = vpop.eup %1461 }
 0x415   : > { %v953_v0 = vmul.f32 1.442695, %v952_v62  ;;  %v620_v1 = vsel %vm450_vm3, %v1462_v63, 0.0 }
 0x416   : > { %621 = vadd.xlane.f32.xlu0 %v620_v1 }
 0x417   : > { %1465 = vpow2.f32 %v953_v0 }
 0x419   : > { %v1464_v2 = vpop.eup %1463 }
 0x41a   : > { %v788_v3 = vsel %vm450_vm3, %v1464_v2, 0.0 }
 0x41b   : > { %789 = vadd.xlane.f32.xlu1 %v788_v3 }
 0x421   : > { %v1466_v4 = vpop.eup %1465 }
 0x422   : > { %v955_v5 = vsel %vm450_vm3, %v1466_v4, 0.0 }
 0x423   : > { %956 = vadd.xlane.f32.xlu0 %v955_v5 }
 0x42c   : > { %962 = vrot.lane.b32.xlu1 %v1714_v30, %s1579_s10  ;;  %s1143_s10 = scalar_lea.sflag [#allocation5], %s1757_s11 }
 0x439   : > { %795 = vrot.lane.b32.xlu0 %v1714_v30, %s1577_s29  ;;  %v1060_v30 = vld [vmem:[%s1897_s4 + $0x30] sm:$0xff] }
 0x43a   : > { %v1399_v34 = vpack.c.bf16 %v1061_v32, %v1060_v30 }
 0x49f   : > { %v459_v7 = vpop.xlane.xlu1 %458 }
 0x4a0   : > { %1467 = vrcp.f32 %v459_v7 }
 0x4a3   : > { %v622_v8 = vpop.xlane.xlu0 %621 }
 0x4a4   : > { %1469 = vrcp.f32 %v622_v8 }
 0x4a8   : > { %v790_v9 = vpop.xlane.xlu1 %789 }
 0x4a9   : > { %1471 = vrcp.f32 %v790_v9 }
 0x4aa   : > { %v1468_v10 = vpop.eup %1467 }
 0x4ab   : > { %v461_v11 = vmul.f32 %v1468_v10, %v1460_v59 }
 0x4ac   : > { %v963_v19 = vpop.permute.xlu1 %962 }
 0x4ad   : > { %1330 = vmatmul.mubr.msk.f32.vlgmr.msra.gmra.mrb[4].mxu1 %vm450_vm3, %v461_v11  ;;  %462 = vst.msk [vmem:[%s1761_s13] sm:$0xff] %vm450_vm3, %v461_v11 }
 0x4ae   : > { %v1470_v12 = vpop.eup %1469  ;;  %1338 = vmatpush3.msra.mxu1 %v629_v6  ;;  %1339 = vmatprep.mubr.msk.f32.mxu1 %vm1572_vm1, %v1571_v14 }
 0x4af   : > { %v624_v13 = vmul.f32 %v1470_v12, %v1462_v63  ;;  %1347 = vmatprep.subr.mxu1 %v1571_v14 }
 0x4b0   : > { %v957_v15 = vpop.xlane.xlu0 %956 }
 0x4b1   : > { %1473 = vrcp.f32 %v957_v15  ;;  %1340 = vmatmul.mubr.msk.f32.vlgmr.msra.gmra.mrb[6].mxu1 %vm450_vm3, %v624_v13  ;;  %1278 = vst.msk [vmem:[%s1761_s13 + $0x8] sm:$0xff] %vm450_vm3, %v624_v13 }
 0x4b2   : > { %1349 = vmatprep.mubr.msk.f32.mxu1 %vm1572_vm1, %v1571_v14 }
 0x4b3   : > { %v1472_v16 = vpop.eup %1471 }
 0x4b4   : > { %v792_v17 = vmul.f32 %v1472_v16, %v1464_v2  ;;  %v796_v18 = vpop.permute.xlu0 %795 }
 0x4b5   : > { %1348 = vmatpush3.msra.mxu1 %v796_v18 }
 0x4b6   : > { %1350 = vmatmul.mubr.msk.f32.vlgmr.msra.gmra.mrb[8].mxu1 %vm450_vm3, %v792_v17  ;;  %1357 = vmatprep.subr.mxu1 %v1571_v14  ;;  %1282 = vst.msk [vmem:[%s1761_s13 + $0x10] sm:$0xff] %vm450_vm3, %v792_v17 }
 0x4b7   : > { %1358 = vmatpush3.msra.mxu1 %v963_v19  ;;  %1359 = vmatprep.mubr.msk.f32.mxu1 %vm1572_vm1, %v1571_v14  ;;  %v1056_v14 = vld [vmem:[%s1897_s4 + $0x10] sm:$0xff] }
 0x4b8   : > { %v1393_v27 = vpack.c.bf16 %v1057_v26, %v1056_v14 }
 0x4ba   : > { %1394 = vmatpush3.bf16.msra.mxu0 %v1393_v27 }
 0x4bb   : > { %v1474_v20 = vpop.eup %1473  ;;  %1395 = vmatprep.subr.bf16.mxu0 %v1580_v24 }
 0x4bc   : > { %v959_v21 = vmul.f32 %v1474_v20, %v1466_v4 }
 0x4be   : > { %1360 = vmatmul.mubr.msk.f32.vlgmr.msra.gmra.mrb[10].mxu1 %vm450_vm3, %v959_v21  ;;  %1286 = vst.msk [vmem:[%s1761_s13 + $0x18] sm:$0xff] %vm450_vm3, %v959_v21  ;;  %1397 = vmatpush3.bf16.msra.mxu0 %v1396_v31 }
 0x4bf   : > { %1398 = vmatprep.subr.bf16.mxu0 %v1580_v24 }
 0x4c2   : > { %1400 = vmatpush3.bf16.msra.mxu0 %v1399_v34 }
 0x580   : > { %v532_v33 = vpop.f32.mrb[4].mxu1 }
 0x581   : > { %v1331_v35 = vpop.f32.mrb[5].mxu1 }
 0x584   : > { %v700_v36 = vpop.f32.mrb[6].mxu1 }
 0x585   : > { %1039 = vrot.lane.b32.xlu1 %v700_v36, %s1578_s9  ;;  %v1341_v37 = vpop.f32.mrb[7].mxu1 }
 0x589   : > { %v867_v38 = vpop.f32.mrb[8].mxu1 }
 0x58a   : > { %1043 = vrot.lane.b32.xlu0 %v867_v38, %s1576_s28  ;;  %v1351_v39 = vpop.f32.mrb[9].mxu1  ;;  %s1169_s28 = sshll.u32 %s1761_s13, 4  ;;  %s1481_s13 = scalar_lea.vmem %s1480_s15, 1024  ;;  %s1812_s28 = int_to_ptr.vmem [resolvable:$true] %s1169_s28 }
 0x58b   : > { %s1475_s12 = scalar_lea.vmem %s1812_s28, 512  ;;  %p1482_p0 = scmp.lt.s32.totalorder %s1812_s28, %s1480_s15 }
 0x58c   : > { %p1476_p11 = scmp.ne.s32.totalorder %s1812_s28, %s1475_s12  ;;  %p1483_p1 = scmp.lt.s32.totalorder %s1481_s13, %s1475_s12 }
 0x58e   : > { %p1477_p12 = pnand %p1476_p11, %p1658_p5  ;;  %p1484_p2 = por %p1483_p1, %p1482_p0 }
 0x590   : > { %p1478_p13 = pneg %p1477_p12 }
 0x591   : > { %v1034_v40 = vpop.f32.mrb[10].mxu1 }
 0x592   : > { %1047 = vrot.lane.b32.xlu1 %v1034_v40, %s1575_s26  ;;  %v1361_v41 = vpop.f32.mrb[11].mxu1  ;;  %s1296_s26 = sshll.u32 %s1641_s25, 9  ;;  %p1485_p3 = pnand %p1484_p2, %p1478_p13 }
 0x593   : > { %s1818_s29 = scalar_lea.hbm %s1899_s6, %s1296_s26 }
 0x5f7   : > { %v1040_v42 = vpop.permute.xlu1 %1039 }
 0x5f8   : > { %v1050_v44 = vsel %vm375_vm2, %v532_v33, %v1040_v42 }
 0x5fc   : > { %v1044_v43 = vpop.permute.xlu0 %1043 }
 0x5fd   : > { %v1051_v45 = vsel %vm259_vm0, %v1050_v44, %v1044_v43 }
 0x604   : > { %v1048_v46 = vpop.permute.xlu1 %1047 }
 0x605   : > { %v1053_v47 = vsel %vm1052_vm4, %v1051_v45, %v1048_v46 }
 0x606   : > { %1379 = vmatmul.mubr.msk.f32.vlgmr.msra.gmra.mrb[6].mxu0 %vm1062_vm5, %v1053_v47 }
 0x607   : > { %1488 = shalt.err (!%p1485_p3)
}
 0x608   : > { %s1489_s16 = scalar_lea.hbm %s1818_s29, 512  ;;  %s1493_s19 = scalar_lea.hbm %s1899_s6, 1024 }
 0x609   : > { %p1490_p4 = scmp.ne.s32.totalorder %s1818_s29, %s1489_s16  ;;  %p1494_p9 = scmp.lt.u32.totalorder %s1818_s29, %s1899_s6 }
 0x60a   : > { %p1495_p10 = scmp.lt.u32.totalorder %s1493_s19, %s1489_s16  ;;  %p1497_p12 = scmp.lt.u32.totalorder %s1489_s16, %s1818_s29 }
 0x60b   : > { %p1491_p7 = pnand %p1490_p4, %p1658_p5 }
 0x60c   : > { %p1496_p11 = por %p1495_p10, %p1494_p9 }
 0x60d   : > { %p1492_p8 = pneg %p1491_p7 }
 0x60e   : > { %p1498_p13 = por %p1497_p12, %p1496_p11 }
 0x610   : > { %p1499_p0 = pnand %p1498_p13, %p1492_p8 }
 0x612   : > { %1502 = shalt.err (!%p1499_p0)
}
 0x613   : > { %s1582_s20 = smov 128   ;;  %s1583_s12 = smov 8  }
 0x614   : > { %1402 = dma.vmem_to_hbm [thread:$0]  (%p1658_p5), %s1812_s28, 512, %s1818_s29, %s1143_s10, %s1582_s20, %s1582_s20, %s1583_s12  }
 0x615   : > { %s1267_s14 = sshll.u32 %s1757_s11, 3  ;;  %s1291_s15 = sshll.u32 %s1641_s25, 7 }
 0x616   : > { %s246_s13 = scalar_lea.vmem [#allocation2], %s1267_s14  ;;  %s1849_s19 = scalar_lea.hbm %s1898_s5, %s1291_s15 }
 0x617   : > { %s1156_s16 = sshll.u32 %s246_s13, 4  ;;  %s1138_s26 = scalar_lea.sflag [#allocation3], %s1757_s11  ;;  %s1851_s16 = int_to_ptr.vmem [resolvable:$true] %s1156_s16 }
 0x618   : > { %s1503_s28 = scalar_lea.vmem %s1851_s16, 128  ;;  %s1584_s25 = smov [#allocation2]  }
 0x619   : > { %p1504_p1 = scmp.ne.s32.totalorder %s1851_s16, %s1503_s28  ;;  %s1507_s29 = sshll.u32 %s1584_s25, 4  ;;  %s1508_s29 = int_to_ptr.vmem [resolvable:$false] %s1507_s29 }
 0x61a   : > { %s1509_s10 = scalar_lea.vmem %s1508_s29, 256  ;;  %p1510_p4 = scmp.lt.s32.totalorder %s1851_s16, %s1508_s29 }
 0x61b   : > { %p1505_p2 = pnand %p1504_p1, %p1658_p5  ;;  %p1511_p7 = scmp.lt.s32.totalorder %s1509_s10, %s1503_s28 }
 0x61d   : > { %p1506_p3 = pneg %p1505_p2  ;;  %p1512_p8 = por %p1511_p7, %p1510_p4 }
 0x61f   : > { %p1513_p9 = pnand %p1512_p8, %p1506_p3 }
 0x6d9   : > { %v1132_v48 = vpop.f32.mrb[6].mxu0 }
 0x6da   : > { %1136 = vst.msk [vmem:[%s246_s13] sm:$0xff] %vm259_vm0, %v1132_v48  ;;  %v1380_v49 = vpop.f32.mrb[7].mxu0 }
 0x6db   : > { %1516 = shalt.err (!%p1513_p9)
}
 0x6dc   : > { %s1517_s11 = scalar_lea.hbm %s1849_s19, 128  ;;  %s1521_s12 = scalar_lea.hbm %s1898_s5, 256 }
 0x6dd   : > { %p1518_p10 = scmp.ne.s32.totalorder %s1849_s19, %s1517_s11  ;;  %p1522_p13 = scmp.lt.u32.totalorder %s1849_s19, %s1898_s5 }
 0x6de   : > { %p1523_p0 = scmp.lt.u32.totalorder %s1521_s12, %s1517_s11  ;;  %p1525_p2 = scmp.lt.u32.totalorder %s1517_s11, %s1849_s19 }
 0x6df   : > { %p1519_p11 = pnand %p1518_p10, %p1658_p5 }
 0x6e0   : > { %p1524_p1 = por %p1523_p0, %p1522_p13 }
 0x6e1   : > { %p1520_p12 = pneg %p1519_p11 }
 0x6e2   : > { %p1526_p3 = por %p1525_p2, %p1524_p1 }
 0x6e4   : > { %p1527_p4 = pnand %p1526_p3, %p1520_p12 }
 0x6e6   : > { %1530 = shalt.err (!%p1527_p4)
}
 0x6e7   : > { %1401 = dma.vmem_to_hbm [thread:$0]  (%p1658_p5), %s1851_s16, 128, %s1849_s19, %s1138_s26  }
 0x6e8 PF: > { %p1412_p7 = scmp.ge.s32.totalorder %s1569_s24, 2  ;;  %s1184_s13 = sand.u32 1, %s1557_s21  }
 0x6e9   : > { %s1185_s17 = scalar_lea.sflag [#allocation3], %s1184_s13 }
 0x6ea   : > { %p1406_p8 = pnand %p1412_p7, %p1662_p6 }
 0x6ec   : > { %1548 = dma.done.wait (!%p1406_p8), %s1185_s17, 128  }
 0x6ed   : > { %1550 = vsyncadd (!%p1406_p8), %s1185_s17, 4294967168  ;;  %s1194_s18 = scalar_lea.sflag [#allocation5], %s1184_s13 }
 0x6ee   : > { %1552 = dma.done.wait (!%p1406_p8), %s1194_s18, 512  }
 0x6ef   : > { %1554 = vsyncadd (!%p1406_p8), %s1194_s18, 4294966784  ;;  %p20_p5 = scmp.ge.s32.totalorder %s1645_s27, 4   ;;  %s1902_s21 = smov %s1561_s22 }
 0x6f0   : > { %s1903_s22 = smov %s1565_s23  ;;  %s1904_s23 = smov %s1656_s30 }
 0x6f1   : > { %s1905_s24 = smov %s1645_s27  ;;  %22 = sbr.rel (!%p20_p5) target bundleno = 5 (0x5), region = 95 }
 0x6f8   :  { %1199 = vsyncpa [#allocation3], 1 }
 0x6f9   :  { %1201 = vsyncpa [#allocation3 + $0x1], 1 }
 0x6fa   :  { %1202 = vsyncpa [#allocation5], 1 }
 0x6fb   :  { %1204 = vsyncpa [#allocation5 + $0x1], 1 }

</bundles_post_ra>
